<compile_context>
chip_gen: v5e
topology: v5e:2x2
jax: 0.10.0
libtpu: 0.0.40
codegen_flags: <defaults>
</compile_context>

<pallas_src>
import functools

import jax
import jax.numpy as jnp
from jax.experimental import pallas as pl
from jax.experimental.pallas import tpu as pltpu

LANE = 128
EPSILON = 1e-6
_LANE_WIDTHS = (4096, 2048, 1024, 512, 256, 128)


def _tpu_vmem_capacity_bytes():
    """Physical per-core VMEM in bytes (conservative fallback if unknown)."""
    try:
        info = pltpu.get_tpu_info()
        cap = int(getattr(info, "vmem_capacity_bytes", 0))
        if cap > 0:
            return cap
    except Exception:
        pass
    return 64 << 20  # v7x per-TC VMEM: safe lower bound for all generations


def _budgets(itemsize):
    """Per-generation VMEM limit, fused-path cutoff (elements), block bytes."""
    vmem_cap = _tpu_vmem_capacity_bytes()
    # Leave headroom for compiler-internal scratch / double buffers.
    vmem_limit = max(32 << 20, min(vmem_cap - (16 << 20), 100 << 20))
    # Fused path footprint per element ~ in + out + f32 temporaries.
    fused_budget = (vmem_limit * 3) // 5
    fused_max_elems = int(fused_budget // (2 * itemsize + 8))
    # Two-pass path: ~4 MiB input blocks, sized in bytes (bf16 gets 2x elems).
    block_bytes = 4 << 20
    return int(vmem_limit), fused_max_elems, block_bytes


# ----------------------------------------------------------------------------
# Kernels
# ----------------------------------------------------------------------------
def _fused_kernel(x_ref, o_ref, *, count, epsilon):
    """Whole tensor in VMEM: reduce + normalize in one pass (2N HBM traffic)."""
    xf = x_ref[...].astype(jnp.float32)
    s = jnp.sum(xf)
    q = jnp.sum(xf * xf)
    mean = s / count
    # Clamp: E[x^2] - mean^2 can go slightly negative from f32 cancellation.
    var = jnp.maximum(q / count - mean * mean, 0.0)
    inv_std = jax.lax.rsqrt(var + epsilon)
    o_ref[...] = ((xf - mean) * inv_std).astype(o_ref.dtype)


def _reduce_kernel(x_ref, s_ref, q_ref, acc_s, acc_q, *,
                   tile_rows, blocks_per_core, valid_rows, need_mask):
    """Pass 1: per-core global sum / sum-of-squares.

    Grid is (2, blocks_per_core): axis 0 ("parallel") shards the row-blocks
    across TensorCores on v7x; axis 1 ("arbitrary") is the reduction.  Each
    step does a per-block sublane reduce into a tiny (1, width) accumulator
    (1 vld + a few VALU adds per vreg, no big accumulator loads/stores); the
    cross-lane collapse to a scalar happens once per core in the epilogue.
    """
    c = pl.program_id(0)
    i = pl.program_id(1)

    @pl.when(i == 0)
    def _init():
        acc_s[...] = jnp.zeros_like(acc_s)
        acc_q[...] = jnp.zeros_like(acc_q)

    x = x_ref[...].astype(jnp.float32)
    if need_mask:
        # Partial tail block and (for an odd block count) the clamped phantom
        # block of the second core: mask with the *unclamped* row index.
        b = c * blocks_per_core + i
        row = b * tile_rows + jax.lax.broadcasted_iota(jnp.int32, x.shape, 0)
        x = jnp.where(row < valid_rows, x, 0.0)

    acc_s[...] += jnp.sum(x, axis=0, keepdims=True)
    acc_q[...] += jnp.sum(x * x, axis=0, keepdims=True)

    @pl.when(i == pl.num_programs(1) - 1)
    def _finalize():
        # One (8, 128) tile per core; the partial sum lives at [0, 0].
        r = jax.lax.broadcasted_iota(jnp.int32, (8, 128), 0)
        l = jax.lax.broadcasted_iota(jnp.int32, (8, 128), 1)
        onehot = jnp.logical_and(r == 0, l == 0)
        s_ref[...] = jnp.where(onehot, jnp.sum(acc_s[...]), 0.0)
        q_ref[...] = jnp.where(onehot, jnp.sum(acc_q[...]), 0.0)


def _normalize_kernel(s_ref, q_ref, x_ref, o_ref, *, count, epsilon):
    """Pass 2: (x - mean) * rsqrt(var + eps); 2-core combine + finalize here."""
    s = jnp.sum(s_ref[...])          # sums the two per-core partial tiles
    q = jnp.sum(q_ref[...])
    mean = s / count
    var = jnp.maximum(q / count - mean * mean, 0.0)
    inv_std = jax.lax.rsqrt(var + epsilon)
    xf = x_ref[...].astype(jnp.float32)
    # NOTE: the tail block computes on undefined rows past the array end; the
    # out-of-bounds writes are dropped by Pallas, so no mask is needed here.
    o_ref[...] = ((xf - mean) * inv_std).astype(o_ref.dtype)


# ----------------------------------------------------------------------------
# Wrapper
# ----------------------------------------------------------------------------
def _global_normalization_impl(x, epsilon, fused_max_elems=None,
                               block_bytes=None):
    orig_shape = x.shape
    n = x.size
    count = float(n)
    itemsize = jnp.dtype(x.dtype).itemsize
    vmem_limit, auto_fused_max, auto_block_bytes = _budgets(itemsize)
    if fused_max_elems is None:
        fused_max_elems = auto_fused_max
    if block_bytes is None:
        block_bytes = auto_block_bytes

    # View x as a lane-dense 2-D slab.  When n % 128 == 0 (common for NCHW
    # activations) this is a pure metadata reshape: no HBM copies.
    if n % LANE == 0:
        padded_n = n
        flat = jnp.reshape(x, (n,))
    else:
        # TODO(synk): handle the <128-element ragged tail in-kernel (masked
        # lane load/store) instead of materializing a padded copy in HBM.
        pad = (-n) % LANE
        padded_n = n + pad
        flat = jnp.pad(jnp.reshape(x, (n,)), (0, pad))  # zeros: no effect on sums

    width = LANE
    for cand in _LANE_WIDTHS:
        if padded_n % cand == 0:
            width = cand
            break
    rows = padded_n // width
    x2d = jnp.reshape(flat, (rows, width))

    if padded_n <= fused_max_elems:
        # Fused single pass: whole slab resident in VMEM -> 2N HBM traffic.
        # TODO(synk): near the cap, pipeline the resident copy internally
        # (emit_pipeline) so the HBM read/write overlaps reduce/normalize.
        out2d = pl.pallas_call(
            functools.partial(_fused_kernel, count=count,
                              epsilon=float(epsilon)),
            out_shape=jax.ShapeDtypeStruct((rows, width), x2d.dtype),
            compiler_params=pltpu.CompilerParams(
                vmem_limit_bytes=vmem_limit),
        )(x2d)
    else:
        # ----- Two-pass path -----
        sub = 16 if itemsize < 4 else 8          # packed sublane granule
        tile_rows = max(sub, ((block_bytes // itemsize) // width) // sub * sub)
        rows_up = pl.cdiv(rows, sub) * sub
        tile_rows = min(tile_rows, rows_up)
        blocks_total = pl.cdiv(rows, tile_rows)
        blocks_per_core = pl.cdiv(blocks_total, 2)
        covered_rows = 2 * blocks_per_core * tile_rows
        need_mask = covered_rows != rows

        def x_map(c, i):
            # Clamp so an odd block count never DMAs past the array; the
            # kernel masks the phantom block via the unclamped row index.
            b = jnp.minimum(c * blocks_per_core + i, blocks_total - 1)
            return (b, 0)

        # --- Pass 1: global reduction (sum, sum of squares), 2-way split ---
        s, q = pl.pallas_call(
            functools.partial(_reduce_kernel, tile_rows=tile_rows,
                              blocks_per_core=blocks_per_core,
                              valid_rows=rows, need_mask=need_mask),
            out_shape=(jax.ShapeDtypeStruct((16, 128), jnp.float32),
                       jax.ShapeDtypeStruct((16, 128), jnp.float32)),
            grid=(2, blocks_per_core),
            in_specs=[pl.BlockSpec((tile_rows, width), x_map)],
            out_specs=(pl.BlockSpec((8, 128), lambda c, i: (c, 0)),
                       pl.BlockSpec((8, 128), lambda c, i: (c, 0))),
            scratch_shapes=[pltpu.VMEM((1, width), jnp.float32),
                            pltpu.VMEM((1, width), jnp.float32)],
            compiler_params=pltpu.CompilerParams(
                dimension_semantics=("parallel", "arbitrary"),
                vmem_limit_bytes=vmem_limit),
        )(x2d)

        # --- Pass 2: elementwise normalization (stats finalized in-kernel) ---
        out2d = pl.pallas_call(
            functools.partial(_normalize_kernel, count=count,
                              epsilon=float(epsilon)),
            out_shape=jax.ShapeDtypeStruct((rows, width), x2d.dtype),
            grid=(blocks_total,),
            in_specs=[pl.BlockSpec((16, 128), lambda i: (0, 0)),
                      pl.BlockSpec((16, 128), lambda i: (0, 0)),
                      pl.BlockSpec((tile_rows, width), lambda i: (i, 0))],
            out_specs=pl.BlockSpec((tile_rows, width), lambda i: (i, 0)),
            compiler_params=pltpu.CompilerParams(
                dimension_semantics=("parallel",),
                vmem_limit_bytes=vmem_limit),
        )(s, q, x2d)

    if padded_n == n:
        return jnp.reshape(out2d, orig_shape)
    return jnp.reshape(jnp.reshape(out2d, (padded_n,))[:n], orig_shape)


def global_normalization(x, epsilon=EPSILON):
    return _global_normalization_impl(x, float(epsilon))


# ----------------------------------------------------------------------------
# Self-test
# ----------------------------------------------------------------------------
if __name__ == "__main__":
    def _reference(x, eps=EPSILON):
        mean = jnp.mean(x)
        var = jnp.mean((x - mean) ** 2)   # unbiased=False
        return (x - mean) * jax.lax.rsqrt(var + eps)

    key = jax.random.PRNGKey(0)
    k1, k2, k3 = jax.random.split(key, 3)

    # 1) Shape implied by the module (NCHW): fused single-pass path, f32.
    x_small = jax.random.normal(k1, (2, 4, 16, 16), dtype=jnp.float32)
    out_small = jax.block_until_ready(global_normalization(x_small))
    assert out_small.shape == x_small.shape and out_small.dtype == x_small.dtype
    assert jnp.allclose(out_small, _reference(x_small), atol=1e-5, rtol=1e-5)

    # 1b) Same shape in bf16 (in-kernel f32 upcast, bf16 output).
    x_bf = x_small.astype(jnp.bfloat16)
    out_bf = jax.block_until_ready(global_normalization(x_bf))
    assert out_bf.shape == x_bf.shape and out_bf.dtype == jnp.bfloat16
    assert jnp.allclose(out_bf.astype(jnp.float32),
                        _reference(x_bf.astype(jnp.float32)),
                        atol=3e-2, rtol=3e-2)

    # 2) Force the two-pass path on a ragged row count (rows=130): exercises
    #    the partial-tail mask and the clamped phantom block of the 2-way split.
    x_ragged = jax.random.normal(k2, (2, 4, 256, 260), dtype=jnp.float32)
    out_ragged = jax.block_until_ready(
        _global_normalization_impl(x_ragged, EPSILON, fused_max_elems=0))
    assert out_ragged.shape == x_ragged.shape
    assert jnp.allclose(out_ragged, _reference(x_ragged), atol=1e-4, rtol=1e-4)

    # 3) Two-pass path with several blocks and an odd block count (3 blocks ->
    #    one phantom block on the second core) plus a partial tail block.
    x_big = jax.random.normal(k3, (4, 8, 128, 640), dtype=jnp.float32)
    out_big = jax.block_until_ready(
        _global_normalization_impl(x_big, EPSILON, fused_max_elems=0))
    assert out_big.shape == x_big.shape and out_big.dtype == x_big.dtype
    assert jnp.allclose(out_big, _reference(x_big), atol=1e-4, rtol=1e-4)

    print("KERNEL_OK")
</pallas_src>

<mosaic_0001>
module attributes {stable_mosaic.version = 11 : i64} {
  func.func @_fused_kernel(%arg0: memref<1x2048xf32, #tpu.memory_space<vmem>>, %arg1: memref<1x2048xf32, #tpu.memory_space<vmem>>) attributes {dimension_semantics = [], scalar_prefetch = 0 : i64, scratch_operands = 0 : i64, tpu.core_type = #tpu.core_type<tc>} {
    %c0 = arith.constant 0 : index
    %c0_0 = arith.constant 0 : index
    %0 = vector.load %arg0[%c0, %c0_0] : memref<1x2048xf32, #tpu.memory_space<vmem>>, vector<1x2048xf32>
    %1 = vector.shape_cast %0 : vector<1x2048xf32> to vector<1x1x2048xf32>
    %cst = arith.constant dense<0.000000e+00> : vector<1xf32>
    %2 = vector.multi_reduction <add>, %1, %cst [1, 2] : vector<1x1x2048xf32> to vector<1xf32>
    %3 = vector.shape_cast %2 : vector<1xf32> to vector<1x1x1xf32>
    %4 = vector.extract %3[0, 0, 0] : f32 from vector<1x1x1xf32>
    %5 = arith.mulf %0, %0 : vector<1x2048xf32>
    %6 = vector.shape_cast %5 : vector<1x2048xf32> to vector<1x1x2048xf32>
    %cst_1 = arith.constant dense<0.000000e+00> : vector<1xf32>
    %7 = vector.multi_reduction <add>, %6, %cst_1 [1, 2] : vector<1x1x2048xf32> to vector<1xf32>
    %8 = vector.shape_cast %7 : vector<1xf32> to vector<1x1x1xf32>
    %9 = vector.extract %8[0, 0, 0] : f32 from vector<1x1x1xf32>
    %cst_2 = arith.constant 2.048000e+03 : f32
    %10 = arith.divf %4, %cst_2 : f32
    %cst_3 = arith.constant 2.048000e+03 : f32
    %11 = arith.divf %9, %cst_3 : f32
    %12 = arith.mulf %10, %10 : f32
    %13 = arith.subf %11, %12 : f32
    %cst_4 = arith.constant 0.000000e+00 : f32
    %14 = arith.maximumf %13, %cst_4 : f32
    %cst_5 = arith.constant 9.99999997E-7 : f32
    %15 = arith.addf %14, %cst_5 : f32
    %16 = math.rsqrt %15 : f32
    %17 = vector.broadcast %10 : f32 to vector<1x2048xf32>
    %18 = arith.subf %0, %17 : vector<1x2048xf32>
    %19 = vector.broadcast %16 : f32 to vector<1x2048xf32>
    %20 = arith.mulf %18, %19 : vector<1x2048xf32>
    %c0_6 = arith.constant 0 : index
    %c0_7 = arith.constant 0 : index
    %21 = vector.load %arg1[%c0_6, %c0_7] : memref<1x2048xf32, #tpu.memory_space<vmem>>, vector<1x2048xf32>
    tpu.vector_store %arg1[%c0_6, %c0_7], %20 {strides = array<i32>} : memref<1x2048xf32, #tpu.memory_space<vmem>>, vector<1x2048xf32>,
    return
  }
}

</mosaic_0001>

<bundles_post_ra>
// kernel: tpu_custom_call.1
= control target key start
LH: loop header
LB: loop body
LE: loop exit
PB: predicated region body
PF: predicated region fallthrough
CT: control target
= control target key end

     0   :  { %6 = vsyncpa [#allocation3], 0  ;;  %s381_s0 = inlined_call_operand.hbm [shape: f32[1,2048], index: 0, kind: input, shape index: {}]   ;;  %s382_s1 = inlined_call_operand.hbm [shape: f32[1,2048], index: 1, kind: output, shape index: {}]  }
   0x1   :  { %7 = vsyncpa [#allocation4], 0  ;;  %s13_s8 = sshll.u32 %s381_s0, 4  ;;  %s303_s9 = smov [#allocation2]   ;;  %s14_s8 = int_to_ptr.hbm [resolvable:$true] %s13_s8 }
   0x2   :  { %s15_s10 = sshll.u32 %s303_s9, 4  ;;  %s16_s10 = int_to_ptr.vmem [resolvable:$true] %s15_s10 }
   0x3   :  { %18 = dma.hbm_to_vmem [thread:$0]  %s14_s8, 256, %s16_s10, [#allocation3]  }
   0x4   :  { %299 = dma.done.wait [#allocation3], 256  }
   0x5   :  { %300 = vsyncadd [#allocation3], 4294967040  ;;  %v320_v0 = vld [vmem:[#allocation2] sm:$0xff]  ;;  %vm59_vm0 = vcmask 1040384   ;;  %v336_v16 = vld [vmem:[#allocation2 + $0x8] sm:$0xff]  ;;  %s305_s17 = smov 0.0  }
   0x6   :  { %v27_v1 = vperm.slane %v320_v0, 0  ;;  %v28_v2 = vperm.slane %v320_v0, 1  ;;  %v29_v3 = vperm.slane %v320_v0, 2  ;;  %v30_v4 = vperm.slane %v320_v0, 3  ;;  %s306_s20 = smov [#allocation5]   ;;  %s225_s25 = sshll.u32 %s382_s1, 4  ;;  %s226_s25 = int_to_ptr.hbm [resolvable:$true] %s225_s25 }
   0x7   :  { %v31_v5 = vperm.slane %v320_v0, 4  ;;  %v32_v10 = vperm.slane %v320_v0, 5  ;;  %v33_v13 = vperm.slane %v320_v0, 6  ;;  %v100_v15 = vmul.f32 %v320_v0, %v320_v0  ;;  %s223_s21 = sshll.u32 %s306_s20, 4  ;;  %s224_s21 = int_to_ptr.vmem [resolvable:$true] %s223_s21 }
   0x8   :  { %v60_v6 = vsel %vm59_vm0, %v27_v1, 0.0  ;;  %v61_v7 = vsel %vm59_vm0, %v28_v2, 0.0  ;;  %v63_v8 = vsel %vm59_vm0, %v29_v3, 0.0  ;;  %v65_v11 = vsel %vm59_vm0, %v30_v4, 0.0 }
   0x9   :  { %v62_v9 = vadd.f32 %v61_v7, %v60_v6  ;;  %v67_v14 = vsel %vm59_vm0, %v31_v5, 0.0  ;;  %v34_v18 = vperm.slane %v320_v0, 7  ;;  %v69_v19 = vsel %vm59_vm0, %v32_v10, 0.0 }
   0xa   :  { %v104_v20 = vperm.slane %v100_v15, 0  ;;  %v105_v21 = vperm.slane %v100_v15, 1  ;;  %v106_v23 = vperm.slane %v100_v15, 2  ;;  %v35_v24 = vperm.slane %v336_v16, 0 }
   0xb   :  { %v64_v12 = vadd.f32 %v63_v8, %v62_v9  ;;  %v71_v25 = vsel %vm59_vm0, %v33_v13, 0.0  ;;  %v107_v26 = vperm.slane %v100_v15, 3  ;;  %v36_v27 = vperm.slane %v336_v16, 1 }
   0xc   :  { %v73_v29 = vsel %vm59_vm0, %v34_v18, 0.0  ;;  %v108_v30 = vperm.slane %v100_v15, 4  ;;  %v136_v31 = vsel %vm59_vm0, %v104_v20, 0.0  ;;  %v137_v32 = vsel %vm59_vm0, %v105_v21, 0.0 }
   0xd   :  { %v66_v17 = vadd.f32 %v65_v11, %v64_v12  ;;  %v138_v34 = vadd.f32 %v137_v32, %v136_v31  ;;  %v139_v35 = vsel %vm59_vm0, %v106_v23, 0.0  ;;  %v37_v36 = vperm.slane %v336_v16, 2 }
   0xe   :  { %v75_v37 = vsel %vm59_vm0, %v35_v24, 0.0  ;;  %v109_v38 = vperm.slane %v100_v15, 5  ;;  %v141_v39 = vsel %vm59_vm0, %v107_v26, 0.0  ;;  %v38_v40 = vperm.slane %v336_v16, 3 }
   0xf   :  { %v68_v22 = vadd.f32 %v67_v14, %v66_v17  ;;  %v140_v42 = vadd.f32 %v139_v35, %v138_v34  ;;  %v77_v43 = vsel %vm59_vm0, %v36_v27, 0.0  ;;  %v101_v44 = vmul.f32 %v336_v16, %v336_v16 }
  0x10   :  { %v110_v45 = vperm.slane %v100_v15, 6  ;;  %v143_v46 = vsel %vm59_vm0, %v108_v30, 0.0  ;;  %v39_v49 = vperm.slane %v336_v16, 4  ;;  %v79_v50 = vsel %vm59_vm0, %v37_v36, 0.0 }
  0x11   :  { %v70_v28 = vadd.f32 %v69_v19, %v68_v22  ;;  %v142_v48 = vadd.f32 %v141_v39, %v140_v42  ;;  %v111_v51 = vperm.slane %v100_v15, 7  ;;  %v145_v52 = vsel %vm59_vm0, %v109_v38, 0.0 }
  0x12   :  { %v40_v55 = vperm.slane %v336_v16, 5  ;;  %v81_v56 = vsel %vm59_vm0, %v38_v40, 0.0  ;;  %v112_v57 = vperm.slane %v101_v44, 0  ;;  %v147_v58 = vsel %vm59_vm0, %v110_v45, 0.0 }
  0x13   :  { %v72_v33 = vadd.f32 %v71_v25, %v70_v28  ;;  %v144_v54 = vadd.f32 %v143_v46, %v142_v48  ;;  %v41_v61 = vperm.slane %v336_v16, 6  ;;  %v83_v62 = vsel %vm59_vm0, %v39_v49, 0.0 }
  0x14   :  { %v113_v63 = vperm.slane %v101_v44, 1  ;;  %v149_v1 = vsel %vm59_vm0, %v111_v51, 0.0  ;;  %v42_v4 = vperm.slane %v336_v16, 7  ;;  %v85_v5 = vsel %vm59_vm0, %v40_v55, 0.0 }
  0x15   :  { %v74_v41 = vadd.f32 %v73_v29, %v72_v33  ;;  %v146_v60 = vadd.f32 %v145_v52, %v144_v54  ;;  %v114_v6 = vperm.slane %v101_v44, 2  ;;  %v151_v7 = vsel %vm59_vm0, %v112_v57, 0.0 }
  0x16   :  { %v87_v10 = vsel %vm59_vm0, %v41_v61, 0.0  ;;  %v115_v11 = vperm.slane %v101_v44, 3  ;;  %v153_v12 = vsel %vm59_vm0, %v113_v63, 0.0  ;;  %v89_v15 = vsel %vm59_vm0, %v42_v4, 0.0 }
  0x17   :  { %v76_v47 = vadd.f32 %v75_v37, %v74_v41  ;;  %v148_v3 = vadd.f32 %v147_v58, %v146_v60  ;;  %v116_v17 = vperm.slane %v101_v44, 4  ;;  %v155_v18 = vsel %vm59_vm0, %v114_v6, 0.0 }
  0x18   :  { %v117_v21 = vperm.slane %v101_v44, 5  ;;  %v157_v22 = vsel %vm59_vm0, %v115_v11, 0.0  ;;  %v118_v25 = vperm.slane %v101_v44, 6  ;;  %v119_v28 = vperm.slane %v101_v44, 7 }
  0x19   :  { %v78_v53 = vadd.f32 %v77_v43, %v76_v47  ;;  %v150_v9 = vadd.f32 %v149_v1, %v148_v3  ;;  %v159_v26 = vsel %vm59_vm0, %v116_v17, 0.0  ;;  %v304_v36 = vmov 2048.0  }
  0x1a   :  { %v161_v29 = vsel %vm59_vm0, %v117_v21, 0.0  ;;  %v163_v31 = vsel %vm59_vm0, %v118_v25, 0.0  ;;  %v165_v33 = vsel %vm59_vm0, %v119_v28, 0.0  ;;  %247 = vrcp.f32 %v304_v36 }
  0x1b   :  { %v80_v59 = vadd.f32 %v79_v50, %v78_v53  ;;  %v152_v14 = vadd.f32 %v151_v7, %v150_v9 }
  0x1d   :  { %v82_v2 = vadd.f32 %v81_v56, %v80_v59  ;;  %v154_v20 = vadd.f32 %v153_v12, %v152_v14 }
  0x1f   :  { %v84_v8 = vadd.f32 %v83_v62, %v82_v2  ;;  %v156_v24 = vadd.f32 %v155_v18, %v154_v20 }
  0x20   :  { %v248_v39 = vpop.eup %247 }
  0x21   :  { %v86_v13 = vadd.f32 %v85_v5, %v84_v8  ;;  %v158_v27 = vadd.f32 %v157_v22, %v156_v24  ;;  %v177_v42 = vmul.f32 2048.0, %v248_v39  ;;  %vm181_vm1 = vweird.f32 %v248_v39 }
  0x23   :  { %v88_v19 = vadd.f32 %v87_v10, %v86_v13  ;;  %v160_v30 = vadd.f32 %v159_v26, %v158_v27  ;;  %v178_v45 = vsub.f32 1.0, %v177_v42 }
  0x25   :  { %v90_v23 = vadd.f32 %v89_v15, %v88_v19  ;;  %v162_v32 = vadd.f32 %v161_v29, %v160_v30  ;;  %v179_v50 = vmul.f32 %v248_v39, %v178_v45 }
  0x27   :  { %91 = vadd.xlane.f32.xlu0 %v90_v23  ;;  %v164_v34 = vadd.f32 %v163_v31, %v162_v32  ;;  %v180_v53 = vadd.f32 %v248_v39, %v179_v50 }
  0x29   :  { %v166_v35 = vadd.f32 %v165_v33, %v164_v34  ;;  %v182_v56 = vsel %vm181_vm1, %v248_v39, %v180_v53 }
  0x2f   :  { %167 = vadd.xlane.f32.xlu0 %v166_v35 }
  0x9a   :  { %v92_v37 = vpop.xlane.xlu0 %91 }
  0x9b   :  { %v93_v38 = vrot.slane %v92_v37, 4 }
  0x9d   :  { %v94_v40 = vadd.f32 %v93_v38, %v92_v37 }
  0x9f   :  { %v95_v41 = vrot.slane %v94_v40, 2 }
  0xa1   :  { %v96_v43 = vadd.f32 %v95_v41, %v94_v40 }
  0xa2   :  { %v168_v46 = vpop.xlane.xlu0 %167 }
  0xa3   :  { %v97_v44 = vrot.slane %v96_v43, 1  ;;  %v169_v47 = vrot.slane %v168_v46, 4 }
  0xa5   :  { %v98_v48 = vadd.f32 %v97_v44, %v96_v43  ;;  %v170_v49 = vadd.f32 %v169_v47, %v168_v46 }
  0xa7   :  { %235 = vpush %v98_v48  ;;  %v171_v51 = vrot.slane %v170_v49, 2 }
  0xa9   :  { %v172_v52 = vadd.f32 %v171_v51, %v170_v49 }
  0xab   :  { %v173_v54 = vrot.slane %v172_v52, 1 }
  0xad   :  { %v174_v55 = vadd.f32 %v173_v54, %v172_v52 }
  0xaf   :  { %237 = vpush %v174_v55 }
  0xb0   :  { %239 = vpush %v182_v56 }
  0xd8   :  { %s236_s0 = spop %235 }
  0xe0   :  { %s238_s11 = spop %237 }
  0xe1   :  { %s240_s12 = spop %239 }
  0xe2   :  { %s184_s13 = smul.f32 %s240_s12, %s236_s0 }
  0xe3   :  { %s193_s14 = smul.f32 %s240_s12, %s238_s11 }
  0xe4   :  { %s194_s15 = smul.f32 %s184_s13, %s184_s13  ;;  %v210_v2 = vstv %s184_s13 }
  0xe5   :  { %v211_v3 = vsub.f32 %v320_v0, %v210_v2  ;;  %v212_v4 = vsub.f32 %v336_v16, %v210_v2 }
  0xe6   :  { %s195_s16 = ssub.f32 %s193_s14, %s194_s15 }
  0xe8   :  { %s196_s18 = smax.f32 %s305_s17, %s195_s16 }
  0xe9   :  { %s197_s19 = sadd.f32 1e-06, %s196_s18 }
  0xeb   :  { %v198_v57 = vstv %s197_s19 }
  0xec   :  { %249 = vrsqrt.f32 %v198_v57  ;;  %vm205_vm3 = vweird.f32 %v198_v57 }
  0xf2   :  { %v250_v58 = vpop.eup %249 }
  0xf3   :  { %v200_v59 = vmul.f32 %v250_v58, %v198_v57  ;;  %vm206_vm2 = vweird.f32 %v250_v58 }
  0xf4   :  { %vm207_vm4 = vmor %vm205_vm3, %vm206_vm2 }
  0xf5   :  { %v201_v60 = vmul.f32 %v250_v58, %v200_v59 }
  0xf7   :  { %v202_v61 = vmul.f32 0.5, %v201_v60 }
  0xf9   :  { %v203_v62 = vsub.f32 1.5, %v202_v61 }
  0xfb   :  { %v204_v63 = vmul.f32 %v250_v58, %v203_v62 }
  0xfd   :  { %v208_v1 = vsel %vm207_vm4, %v250_v58, %v204_v63 }
  0xfe   :  { %241 = vpush %v208_v1 }
 0x12f   :  { %s242_s22 = spop %241 }
 0x130   :  { %v213_v5 = vstv %s242_s22 }
 0x131   :  { %v214_v6 = vmul.f32 %v213_v5, %v211_v3  ;;  %v215_v7 = vmul.f32 %v213_v5, %v212_v4 }
 0x133   :  { %216 = vst [vmem:[#allocation5] sm:$0xff] %v214_v6 }
 0x134   :  { %217 = vst [vmem:[#allocation5 + $0x8] sm:$0xff] %v215_v7 }
 0x135   :  { %228 = dma.vmem_to_hbm [thread:$0]  %s224_s21, 256, %s226_s25, [#allocation4]  }
 0x136   :  { %301 = dma.done.wait [#allocation4], 256  }
 0x137   :  { %302 = vsyncadd [#allocation4], 4294967040 }
 0x138   :  { %233 = vsyncpa [#allocation3], 1 }
 0x139   :  { %234 = vsyncpa [#allocation4], 1 }

</bundles_post_ra>
